<compile_context>
chip_gen: v7x
topology: tpu7x:2x2x1
jax: 0.10.0
libtpu: 0.0.40
codegen_flags: <defaults>
</compile_context>

<pallas_src>
import jax
import jax.numpy as jnp
from jax.experimental import pallas as pl
from jax.experimental.pallas import tpu as pltpu


def rnn_fc_kernel(x_ref, p_ref, out_ref):
    """Full-sequence RNN recurrence + final Linear, single program.

    x_ref:   (T*B, F)       batch-major flattened input (row = b*T + t)
    p_ref:   (H+F+3, H)     packed params:
                              rows [0, H)        : W_hh^T          (H, H)
                              rows [H, H+F)      : W_ih^T          (F, H)
                              row  H+F           : b_ih + b_hh     (H,)
                              row  H+F+1         : fc weight row   (H,)
                              row  H+F+2, col 0  : fc bias scalar
    out_ref: (B, 1)
    """
    TB, F = x_ref.shape
    B = out_ref.shape[0]
    T = TB // B
    H = p_ref.shape[1]

    # Static slices of the packed parameter slab.
    whh = p_ref[0:H, :]                        # (H, H)
    wih = p_ref[H:H + F, :]                    # (F, H)
    b = p_ref[H + F:H + F + 1, :]              # (1, H)
    wfc = p_ref[H + F + 1:H + F + 2, :]        # (1, H)
    bfc = p_ref[H + F + 2:H + F + 3, 0:1]      # (1, 1)

    # Single hoisted input projection for all T*B rows (off the serial chain).
    xw_flat = jnp.dot(x_ref[...], wih, preferred_element_type=jnp.float32) + b
    xw = xw_flat.reshape(B, T, H)              # batch-major rows -> (B, T, H)

    # Recurrence (statically unrolled, T is compile-time).  h_0 = 0 so the
    # first step is just tanh of the projected input: 7 matmuls on the chain.
    h = jnp.tanh(xw[:, 0, :])
    for t in range(1, T):
        h = jnp.tanh(
            xw[:, t, :] + jnp.dot(h, whh, preferred_element_type=jnp.float32)
        )

    # Final Linear(H -> 1): broadcast-multiply + lane reduce (XLU), + bias.
    out_ref[...] = jnp.sum(h * wfc, axis=-1, keepdims=True) + bfc


def pack_params(w_ih, w_hh, b_ih, b_hh, w_fc, b_fc):
    """One-time parameter prep: pack all weights/biases into one VMEM slab.

    PyTorch layouts: w_ih (H, F), w_hh (H, H), w_fc (1, H).
    Slab layout matches rnn_fc_kernel's expectations (see its docstring).
    """
    H, F = w_ih.shape
    rows = H + F + 3
    p = jnp.zeros((rows, H), jnp.float32)
    p = p.at[0:H, :].set(jnp.transpose(w_hh).astype(jnp.float32))
    p = p.at[H:H + F, :].set(jnp.transpose(w_ih).astype(jnp.float32))
    p = p.at[H + F, :].set((b_ih + b_hh).astype(jnp.float32))
    p = p.at[H + F + 1, :].set(w_fc.reshape(H).astype(jnp.float32))
    p = p.at[H + F + 2, 0].set(b_fc.reshape(()).astype(jnp.float32))
    return p


def rnn_forward(x_btf, params):
    """x_btf: (B, T, F) batch-first like PyTorch. params: packed slab. -> (B, 1)."""
    B, T, F = x_btf.shape
    H = params.shape[1]

    # Free batch-major flattening: row index = b*T + t (no transpose per call).
    x_flat = x_btf.astype(jnp.float32).reshape(B * T, F)

    full = lambda shape: pl.BlockSpec(shape, lambda: tuple(0 for _ in shape))

    flops = 2 * (B * T) * F * H + 2 * (T - 1) * B * H * H + 2 * B * H
    bytes_accessed = (B * T * F + params.shape[0] * H + B) * 4

    return pl.pallas_call(
        rnn_fc_kernel,
        out_shape=jax.ShapeDtypeStruct((B, 1), jnp.float32),
        grid=(),
        in_specs=[
            full((B * T, F)),
            full(params.shape),
        ],
        out_specs=full((B, 1)),
        cost_estimate=pl.CostEstimate(
            flops=flops,
            transcendentals=T * B * H,
            bytes_accessed=bytes_accessed,
        ),
    )(x_flat, params)


def rnn_forward_ref(x_btf, w_ih, w_hh, b_ih, b_hh, w_fc, b_fc):
    """Pure-JAX reference mirroring torch.nn.RNN(batch_first=True) + Linear."""
    B, T, F = x_btf.shape
    H = w_hh.shape[0]
    h = jnp.zeros((B, H), jnp.float32)
    for t in range(T):
        h = jnp.tanh(x_btf[:, t, :] @ w_ih.T + b_ih + h @ w_hh.T + b_hh)
    return h @ w_fc.T + b_fc


if __name__ == "__main__":
    INPUT, HIDDEN, OUT = 14, 16, 1
    B, T = 2, 8

    key = jax.random.PRNGKey(0)
    k_x, k1, k2, k3, k4, k5, k6 = jax.random.split(key, 7)

    # PyTorch-style uniform(-1/sqrt(H), 1/sqrt(H)) synthetic parameters.
    s = 1.0 / jnp.sqrt(jnp.float32(HIDDEN))
    w_ih = jax.random.uniform(k1, (HIDDEN, INPUT), jnp.float32, -s, s)
    w_hh = jax.random.uniform(k2, (HIDDEN, HIDDEN), jnp.float32, -s, s)
    b_ih = jax.random.uniform(k3, (HIDDEN,), jnp.float32, -s, s)
    b_hh = jax.random.uniform(k4, (HIDDEN,), jnp.float32, -s, s)
    w_fc = jax.random.uniform(k5, (OUT, HIDDEN), jnp.float32, -s, s)
    b_fc = jax.random.uniform(k6, (OUT,), jnp.float32, -s, s)

    x = jax.random.normal(k_x, (B, T, INPUT), jnp.float32)

    # One-time parameter prep (hoisted out of the per-call path).
    params = jax.block_until_ready(pack_params(w_ih, w_hh, b_ih, b_hh, w_fc, b_fc))

    out = rnn_forward(x, params)
    out = jax.block_until_ready(out)

    ref = rnn_forward_ref(x, w_ih, w_hh, b_ih, b_hh, w_fc, b_fc)
    assert out.shape == (B, OUT), out.shape
    assert jnp.allclose(out, ref, atol=1e-5, rtol=1e-5), (out, ref)

    print("KERNEL_OK")
</pallas_src>

<mosaic_0001>
module attributes {stable_mosaic.version = 11 : i64} {
  func.func @rnn_fc_kernel(%arg0: memref<16x14xf32, #tpu.memory_space<vmem>>, %arg1: memref<33x16xf32, #tpu.memory_space<vmem>>, %arg2: memref<2x1xf32, #tpu.memory_space<vmem>>) attributes {dimension_semantics = [], scalar_prefetch = 0 : i64, scratch_operands = 0 : i64, tpu.core_type = #tpu.core_type<tc>} {
    %c0 = arith.constant 0 : index
    %c0_0 = arith.constant 0 : index
    %0 = vector.load %arg1[%c0, %c0_0] : memref<33x16xf32, #tpu.memory_space<vmem>>, vector<16x16xf32>
    %c16 = arith.constant 16 : index
    %c0_1 = arith.constant 0 : index
    %1 = vector.load %arg1[%c16, %c0_1] : memref<33x16xf32, #tpu.memory_space<vmem>>, vector<14x16xf32>
    %c30 = arith.constant 30 : index
    %c0_2 = arith.constant 0 : index
    %2 = vector.load %arg1[%c30, %c0_2] : memref<33x16xf32, #tpu.memory_space<vmem>>, vector<1x16xf32>
    %c31 = arith.constant 31 : index
    %c0_3 = arith.constant 0 : index
    %3 = vector.load %arg1[%c31, %c0_3] : memref<33x16xf32, #tpu.memory_space<vmem>>, vector<1x16xf32>
    %c32 = arith.constant 32 : index
    %c0_4 = arith.constant 0 : index
    %4 = vector.load %arg1[%c32, %c0_4] : memref<33x16xf32, #tpu.memory_space<vmem>>, vector<1x1xf32>
    %c0_5 = arith.constant 0 : index
    %c0_6 = arith.constant 0 : index
    %5 = vector.load %arg0[%c0_5, %c0_6] : memref<16x14xf32, #tpu.memory_space<vmem>>, vector<16x14xf32>
    %cst = arith.constant dense<0.000000e+00> : vector<16x16xf32>
    %6 = tpu.matmul %5, %1, %cst {dimension_numbers = #tpu.dot_dimension_numbers<[1], [0], [0], [1], [0, 0, 1, 1], [], []>} : vector<16x14xf32>, vector<14x16xf32>, vector<16x16xf32> -> vector<16x16xf32>
    %7 = vector.broadcast %2 : vector<1x16xf32> to vector<16x16xf32>
    %8 = arith.addf %6, %7 : vector<16x16xf32>
    %9 = vector.shape_cast %8 : vector<16x16xf32> to vector<2x8x16xf32>
    %10 = vector.extract_strided_slice %9 {offsets = [0, 0, 0], sizes = [2, 1, 16], strides = [1, 1, 1]} : vector<2x8x16xf32> to vector<2x1x16xf32>
    %11 = vector.shape_cast %10 : vector<2x1x16xf32> to vector<2x16xf32>
    %12 = math.tanh %11 : vector<2x16xf32>
    %13 = vector.extract_strided_slice %9 {offsets = [0, 1, 0], sizes = [2, 1, 16], strides = [1, 1, 1]} : vector<2x8x16xf32> to vector<2x1x16xf32>
    %14 = vector.shape_cast %13 : vector<2x1x16xf32> to vector<2x16xf32>
    %cst_7 = arith.constant dense<0.000000e+00> : vector<2x16xf32>
    %15 = tpu.matmul %12, %0, %cst_7 {dimension_numbers = #tpu.dot_dimension_numbers<[1], [0], [0], [1], [0, 0, 1, 1], [], []>} : vector<2x16xf32>, vector<16x16xf32>, vector<2x16xf32> -> vector<2x16xf32>
    %16 = arith.addf %14, %15 : vector<2x16xf32>
    %17 = math.tanh %16 : vector<2x16xf32>
    %18 = vector.extract_strided_slice %9 {offsets = [0, 2, 0], sizes = [2, 1, 16], strides = [1, 1, 1]} : vector<2x8x16xf32> to vector<2x1x16xf32>
    %19 = vector.shape_cast %18 : vector<2x1x16xf32> to vector<2x16xf32>
    %cst_8 = arith.constant dense<0.000000e+00> : vector<2x16xf32>
    %20 = tpu.matmul %17, %0, %cst_8 {dimension_numbers = #tpu.dot_dimension_numbers<[1], [0], [0], [1], [0, 0, 1, 1], [], []>} : vector<2x16xf32>, vector<16x16xf32>, vector<2x16xf32> -> vector<2x16xf32>
    %21 = arith.addf %19, %20 : vector<2x16xf32>
    %22 = math.tanh %21 : vector<2x16xf32>
    %23 = vector.extract_strided_slice %9 {offsets = [0, 3, 0], sizes = [2, 1, 16], strides = [1, 1, 1]} : vector<2x8x16xf32> to vector<2x1x16xf32>
    %24 = vector.shape_cast %23 : vector<2x1x16xf32> to vector<2x16xf32>
    %cst_9 = arith.constant dense<0.000000e+00> : vector<2x16xf32>
    %25 = tpu.matmul %22, %0, %cst_9 {dimension_numbers = #tpu.dot_dimension_numbers<[1], [0], [0], [1], [0, 0, 1, 1], [], []>} : vector<2x16xf32>, vector<16x16xf32>, vector<2x16xf32> -> vector<2x16xf32>
    %26 = arith.addf %24, %25 : vector<2x16xf32>
    %27 = math.tanh %26 : vector<2x16xf32>
    %28 = vector.extract_strided_slice %9 {offsets = [0, 4, 0], sizes = [2, 1, 16], strides = [1, 1, 1]} : vector<2x8x16xf32> to vector<2x1x16xf32>
    %29 = vector.shape_cast %28 : vector<2x1x16xf32> to vector<2x16xf32>
    %cst_10 = arith.constant dense<0.000000e+00> : vector<2x16xf32>
    %30 = tpu.matmul %27, %0, %cst_10 {dimension_numbers = #tpu.dot_dimension_numbers<[1], [0], [0], [1], [0, 0, 1, 1], [], []>} : vector<2x16xf32>, vector<16x16xf32>, vector<2x16xf32> -> vector<2x16xf32>
    %31 = arith.addf %29, %30 : vector<2x16xf32>
    %32 = math.tanh %31 : vector<2x16xf32>
    %33 = vector.extract_strided_slice %9 {offsets = [0, 5, 0], sizes = [2, 1, 16], strides = [1, 1, 1]} : vector<2x8x16xf32> to vector<2x1x16xf32>
    %34 = vector.shape_cast %33 : vector<2x1x16xf32> to vector<2x16xf32>
    %cst_11 = arith.constant dense<0.000000e+00> : vector<2x16xf32>
    %35 = tpu.matmul %32, %0, %cst_11 {dimension_numbers = #tpu.dot_dimension_numbers<[1], [0], [0], [1], [0, 0, 1, 1], [], []>} : vector<2x16xf32>, vector<16x16xf32>, vector<2x16xf32> -> vector<2x16xf32>
    %36 = arith.addf %34, %35 : vector<2x16xf32>
    %37 = math.tanh %36 : vector<2x16xf32>
    %38 = vector.extract_strided_slice %9 {offsets = [0, 6, 0], sizes = [2, 1, 16], strides = [1, 1, 1]} : vector<2x8x16xf32> to vector<2x1x16xf32>
    %39 = vector.shape_cast %38 : vector<2x1x16xf32> to vector<2x16xf32>
    %cst_12 = arith.constant dense<0.000000e+00> : vector<2x16xf32>
    %40 = tpu.matmul %37, %0, %cst_12 {dimension_numbers = #tpu.dot_dimension_numbers<[1], [0], [0], [1], [0, 0, 1, 1], [], []>} : vector<2x16xf32>, vector<16x16xf32>, vector<2x16xf32> -> vector<2x16xf32>
    %41 = arith.addf %39, %40 : vector<2x16xf32>
    %42 = math.tanh %41 : vector<2x16xf32>
    %43 = vector.extract_strided_slice %9 {offsets = [0, 7, 0], sizes = [2, 1, 16], strides = [1, 1, 1]} : vector<2x8x16xf32> to vector<2x1x16xf32>
    %44 = vector.shape_cast %43 : vector<2x1x16xf32> to vector<2x16xf32>
    %cst_13 = arith.constant dense<0.000000e+00> : vector<2x16xf32>
    %45 = tpu.matmul %42, %0, %cst_13 {dimension_numbers = #tpu.dot_dimension_numbers<[1], [0], [0], [1], [0, 0, 1, 1], [], []>} : vector<2x16xf32>, vector<16x16xf32>, vector<2x16xf32> -> vector<2x16xf32>
    %46 = arith.addf %44, %45 : vector<2x16xf32>
    %47 = math.tanh %46 : vector<2x16xf32>
    %48 = vector.broadcast %3 : vector<1x16xf32> to vector<2x16xf32>
    %49 = arith.mulf %47, %48 : vector<2x16xf32>
    %cst_14 = arith.constant dense<0.000000e+00> : vector<2xf32>
    %50 = vector.multi_reduction <add>, %49, %cst_14 [1] : vector<2x16xf32> to vector<2xf32>
    %51 = vector.shape_cast %50 : vector<2xf32> to vector<2x1xf32>
    %52 = vector.broadcast %4 : vector<1x1xf32> to vector<2x1xf32>
    %53 = arith.addf %51, %52 : vector<2x1xf32>
    %c0_15 = arith.constant 0 : index
    %c0_16 = arith.constant 0 : index
    %54 = vector.load %arg2[%c0_15, %c0_16] : memref<2x1xf32, #tpu.memory_space<vmem>>, vector<2x1xf32>
    tpu.vector_store %arg2[%c0_15, %c0_16], %53 {strides = array<i32>} : memref<2x1xf32, #tpu.memory_space<vmem>>, vector<2x1xf32>,
    return
  }
}

</mosaic_0001>

<bundles_post_ra>
// kernel: tpu_custom_call.1
= control target key start
LH: loop header
LB: loop body
LE: loop exit
PB: predicated region body
PF: predicated region fallthrough
CT: control target
= control target key end

     0   :  { %vm31_vm0 = vcmask 1045504   ;;  %vm24_vm1 = vcmask 113664   ;;  %vm903_vm2 = vmmov 1   ;;  %v904_v7 = vmov 0.0|0.0   ;;  %s1012_s1 = inlined_call_operand.vmem [shape: f32[33,16], index: 1, kind: input, shape index: {}]   ;;  %s1013_s0 = inlined_call_operand.vmem [shape: f32[16,14], index: 0, kind: input, shape index: {}]   ;;  %s1014_s2 = inlined_call_operand.vmem [shape: f32[2,1], index: 2, kind: output, shape index: {}]  }
   0x1   :  { %v13_v0 = vld [vmem:[%s1012_s1 + $0x10] sm:$0xff]  ;;  %v14_v1 = vld [vmem:[%s1012_s1 + $0x18] sm:$0x3f]  ;;  %vm841_vm3 = vmpackc.low %vm31_vm0, %vm903_vm2  ;;  %846 = vmatprep.subr.bf16.mxu1 %v904_v7  ;;  %vm905_vm4 = vmmov 0   ;;  %v906_v9 = vmov 0.0   ;;  %vm115_vm5 = vcmask 1041409  }
   0x2   :  { %v840_v2 = vpack.c.bf16 %v14_v1, %v13_v0  ;;  %v18_v3 = vld [vmem:[%s1013_s0] sm:$0xff]  ;;  %v19_v4 = vld [vmem:[%s1013_s0 + $0x8] sm:$0xff]  ;;  %795 = vmatprep.mubr.msk.f32.mxu1 %vm905_vm4, %v906_v9  ;;  %v746_v10 = vld [vmem:[%s1012_s1 + $0x1e] ss:$0 sm:$0xff]  ;;  %vm117_vm6 = vcmask 130048   ;;  %vm724_vm7 = vcmask 130055  }
   0x3   :  { %788 = vmatprep.mubr.msk.f32.mxu0 %vm24_vm1, %v18_v3  ;;  %v11_v5 = vld [vmem:[%s1012_s1] sm:$0xff]  ;;  %v12_v6 = vld [vmem:[%s1012_s1 + $0x8] sm:$0xff]  ;;  %vm728_vm8 = vcmask 122880   ;;  %vm738_vm9 = vcmask 7175   ;;  %vm740_vm10 = vcmask 0  }
   0x4   :  { %842 = vmatprep.subr.msk.bf16.mxu0 %vm841_vm3, %v840_v2  ;;  %v940_v8 = vpack.c.bf16 %v12_v6, %v11_v5 }
   0x5   :  { %845 = vmatpush3.bf16.msk.msra.mxu0 %vm841_vm3, %v840_v2 }
   0x6   :  { %849 = vmatprep.subr.bf16.mxu0 %v904_v7  ;;  %848 = vmatpush3.bf16.msra.mxu1 %v940_v8 }
   0x7   :  { %852 = vmatprep.subr.bf16.mxu1 %v904_v7 }
   0x8   :  { %789 = vmatmul.mubr.msk.f32.vlgmr.msra.gmra.mrb[0].mxu0 %vm24_vm1, %v19_v4 }
   0x9   :  { %802 = vmatprep.mubr.msk.f32.mxu0 %vm905_vm4, %v906_v9  ;;  %851 = vmatpush3.bf16.msra.mxu0 %v940_v8 }
   0xa   :  { %855 = vmatprep.subr.bf16.mxu0 %v904_v7 }
  0xdb   :  { %v790_v11 = vpop.f32.mrb[0].mxu0 }
  0xdc   :  { %v951_v12 = vadd.f32 %v790_v11, %v746_v10  ;;  %v101_v13 = vpop.f32.mrb[1].mxu0 }
  0xdd   :  { %v953_v14 = vadd.f32 %v746_v10, %v101_v13 }
  0xde   :  { %871 = vtanh.f32 %v951_v12 }
  0xdf   :  { %873 = vtanh.f32 %v953_v14 }
  0xe8   :  { %v872_v15 = vpop.eup %871 }
  0xe9   :  { %v874_v16 = vpop.eup %873  ;;  %v114_v17 = vrot.slane %v872_v15, 7 }
  0xeb   :  { %v116_v18 = vsel %vm115_vm5, %v114_v17, %v874_v16 }
  0xec   :  { %796 = vmatmul.mubr.msk.f32.vlgmr.msra.gmra.mrb[0].mxu1 %vm117_vm6, %v116_v18 }
  0xed   :  { %854 = vmatpush3.bf16.msra.mxu1 %v940_v8  ;;  %809 = vmatprep.mubr.msk.f32.mxu1 %vm905_vm4, %v906_v9 }
  0xee   :  { %858 = vmatprep.subr.bf16.mxu1 %v904_v7 }
 0x1bf   :  { %v186_v19 = vpop.f32.mrb[0].mxu1 }
 0x1c0   :  { %v191_v20 = vrot.slane %v186_v19, 7  ;;  %v797_v21 = vpop.f32.mrb[1].mxu1  ;;  %v195_v23 = vadd.f32 %v186_v19, %v951_v12 }
 0x1c2   :  { %v194_v22 = vadd.f32 %v191_v20, %v953_v14 }
 0x1c4   :  { %875 = vtanh.f32 %v194_v22 }
 0x1c5   :  { %877 = vtanh.f32 %v195_v23 }
 0x1ce   :  { %v876_v24 = vpop.eup %875 }
 0x1cf   :  { %v200_v25 = vrot.slane %v876_v24, 1  ;;  %v878_v26 = vpop.eup %877 }
 0x1d1   :  { %v201_v27 = vsel %vm115_vm5, %v878_v26, %v200_v25 }
 0x1d2   :  { %803 = vmatmul.mubr.msk.f32.vlgmr.msra.gmra.mrb[2].mxu0 %vm117_vm6, %v201_v27  ;;  %v757_v27 = vld [vmem:[%s1012_s1 + $0x1f] ss:$0 sm:$0xff] }
 0x1d3   :  { %857 = vmatpush3.bf16.msra.mxu0 %v940_v8  ;;  %816 = vmatprep.mubr.msk.f32.mxu0 %vm905_vm4, %v906_v9 }
 0x1d4   :  { %861 = vmatprep.subr.bf16.mxu0 %v904_v7 }
 0x2a5   :  { %v270_v28 = vpop.f32.mrb[2].mxu0 }
 0x2a6   :  { %v275_v29 = vrot.slane %v270_v28, 6  ;;  %v276_v30 = vrot.slane %v270_v28, 7  ;;  %v804_v31 = vpop.f32.mrb[3].mxu0 }
 0x2a8   :  { %v279_v32 = vadd.f32 %v275_v29, %v953_v14  ;;  %v280_v33 = vadd.f32 %v276_v30, %v951_v12 }
 0x2aa   :  { %879 = vtanh.f32 %v279_v32 }
 0x2ab   :  { %881 = vtanh.f32 %v280_v33 }
 0x2b4   :  { %v880_v34 = vpop.eup %879 }
 0x2b5   :  { %v882_v35 = vpop.eup %881  ;;  %v285_v36 = vrot.slane %v880_v34, 2 }
 0x2b6   :  { %v286_v37 = vrot.slane %v882_v35, 1 }
 0x2b8   :  { %v287_v38 = vsel %vm115_vm5, %v286_v37, %v285_v36 }
 0x2b9   :  { %810 = vmatmul.mubr.msk.f32.vlgmr.msra.gmra.mrb[2].mxu1 %vm117_vm6, %v287_v38 }
 0x2ba   :  { %860 = vmatpush3.bf16.msra.mxu1 %v940_v8  ;;  %823 = vmatprep.mubr.msk.f32.mxu1 %vm905_vm4, %v906_v9 }
 0x2bb   :  { %864 = vmatprep.subr.bf16.mxu1 %v904_v7 }
 0x38c   :  { %v356_v39 = vpop.f32.mrb[2].mxu1 }
 0x38d   :  { %v361_v40 = vrot.slane %v356_v39, 5  ;;  %v362_v41 = vrot.slane %v356_v39, 6  ;;  %v811_v42 = vpop.f32.mrb[3].mxu1 }
 0x38f   :  { %v365_v43 = vadd.f32 %v361_v40, %v953_v14  ;;  %v366_v44 = vadd.f32 %v362_v41, %v951_v12 }
 0x391   :  { %883 = vtanh.f32 %v365_v43 }
 0x392   :  { %885 = vtanh.f32 %v366_v44 }
 0x39b   :  { %v884_v45 = vpop.eup %883 }
 0x39c   :  { %v886_v46 = vpop.eup %885  ;;  %v371_v47 = vrot.slane %v884_v45, 3 }
 0x39d   :  { %v372_v48 = vrot.slane %v886_v46, 2 }
 0x39f   :  { %v373_v49 = vsel %vm115_vm5, %v372_v48, %v371_v47 }
 0x3a0   :  { %817 = vmatmul.mubr.msk.f32.vlgmr.msra.gmra.mrb[4].mxu0 %vm117_vm6, %v373_v49 }
 0x3a1   :  { %863 = vmatpush3.bf16.msra.mxu0 %v940_v8  ;;  %830 = vmatprep.mubr.msk.f32.mxu0 %vm905_vm4, %v906_v9 }
 0x473   :  { %v442_v50 = vpop.f32.mrb[4].mxu0 }
 0x474   :  { %v447_v51 = vrot.slane %v442_v50, 4  ;;  %v448_v52 = vrot.slane %v442_v50, 5  ;;  %v818_v53 = vpop.f32.mrb[5].mxu0 }
 0x476   :  { %v451_v54 = vadd.f32 %v447_v51, %v953_v14  ;;  %v452_v55 = vadd.f32 %v448_v52, %v951_v12 }
 0x478   :  { %887 = vtanh.f32 %v451_v54 }
 0x479   :  { %889 = vtanh.f32 %v452_v55 }
 0x482   :  { %v888_v56 = vpop.eup %887 }
 0x483   :  { %v890_v57 = vpop.eup %889  ;;  %v457_v58 = vrot.slane %v888_v56, 4 }
 0x484   :  { %v458_v59 = vrot.slane %v890_v57, 3 }
 0x486   :  { %v459_v60 = vsel %vm115_vm5, %v458_v59, %v457_v58 }
 0x487   :  { %824 = vmatmul.mubr.msk.f32.vlgmr.msra.gmra.mrb[4].mxu1 %vm117_vm6, %v459_v60 }
 0x488   :  { %866 = vmatpush3.bf16.msra.mxu1 %v940_v8  ;;  %837 = vmatprep.mubr.msk.f32.mxu1 %vm905_vm4, %v906_v9 }
 0x55a   :  { %v528_v61 = vpop.f32.mrb[4].mxu1 }
 0x55b   :  { %v533_v62 = vrot.slane %v528_v61, 3  ;;  %v534_v63 = vrot.slane %v528_v61, 4  ;;  %v825_v0 = vpop.f32.mrb[5].mxu1 }
 0x55d   :  { %v537_v1 = vadd.f32 %v533_v62, %v953_v14  ;;  %v538_v2 = vadd.f32 %v534_v63, %v951_v12 }
 0x55f   :  { %891 = vtanh.f32 %v537_v1 }
 0x560   :  { %893 = vtanh.f32 %v538_v2 }
 0x569   :  { %v892_v3 = vpop.eup %891 }
 0x56a   :  { %v894_v4 = vpop.eup %893  ;;  %v543_v5 = vrot.slane %v892_v3, 5 }
 0x56b   :  { %v544_v6 = vrot.slane %v894_v4, 4 }
 0x56d   :  { %v545_v7 = vsel %vm115_vm5, %v544_v6, %v543_v5 }
 0x56e   :  { %831 = vmatmul.mubr.msk.f32.vlgmr.msra.gmra.mrb[6].mxu0 %vm117_vm6, %v545_v7 }
 0x641   :  { %v614_v8 = vpop.f32.mrb[6].mxu0 }
 0x642   :  { %v619_v9 = vrot.slane %v614_v8, 2  ;;  %v620_v10 = vrot.slane %v614_v8, 3  ;;  %v832_v11 = vpop.f32.mrb[7].mxu0 }
 0x644   :  { %v623_v13 = vadd.f32 %v619_v9, %v953_v14  ;;  %v624_v15 = vadd.f32 %v620_v10, %v951_v12 }
 0x646   :  { %895 = vtanh.f32 %v623_v13 }
 0x647   :  { %897 = vtanh.f32 %v624_v15 }
 0x650   :  { %v896_v16 = vpop.eup %895 }
 0x651   :  { %v898_v17 = vpop.eup %897  ;;  %v629_v18 = vrot.slane %v896_v16, 6 }
 0x652   :  { %v630_v19 = vrot.slane %v898_v17, 5 }
 0x654   :  { %v631_v20 = vsel %vm115_vm5, %v630_v19, %v629_v18 }
 0x655   :  { %838 = vmatmul.mubr.msk.f32.vlgmr.msra.gmra.mrb[6].mxu1 %vm117_vm6, %v631_v20 }
 0x728   :  { %v700_v21 = vpop.f32.mrb[6].mxu1 }
 0x729   :  { %v705_v22 = vrot.slane %v700_v21, 1  ;;  %v706_v23 = vrot.slane %v700_v21, 2  ;;  %v839_v24 = vpop.f32.mrb[7].mxu1 }
 0x72b   :  { %v709_v25 = vadd.f32 %v705_v22, %v953_v14  ;;  %v710_v26 = vadd.f32 %v706_v23, %v951_v12  ;;  %v758_v12 = vld [vmem:[%s1012_s1 + $0x20] ss:$0 sm:$0xff] }
 0x72d   :  { %899 = vtanh.f32 %v709_v25 }
 0x72e   :  { %901 = vtanh.f32 %v710_v26 }
 0x737   :  { %v900_v28 = vpop.eup %899 }
 0x738   :  { %v902_v29 = vpop.eup %901  ;;  %v717_v30 = vmul.f32 %v900_v28, %v757_v27 }
 0x739   :  { %v718_v31 = vmul.f32 %v902_v29, %v757_v27 }
 0x73a   :  { %v725_v32 = vsel %vm724_vm7, %v717_v30, 0.0 }
 0x73b   :  { %726 = vadd.xlane.f32.xlu0 %v725_v32  ;;  %v721_v33 = vrot.slane %v718_v31, 7 }
 0x73d   :  { %v729_v34 = vsel %vm728_vm8, %v721_v33, 0.0 }
 0x73f   :  { %730 = vadd.xlane.f32.xlu0 %v729_v34 }
 0x7c8   :  { %v727_v14 = vpop.xlane.xlu0 %726 }
 0x7c9   :  { %v736_v35 = vadd.f32 %v758_v12, %v727_v14 }
 0x7cb   :  { %739 = vst.msk [vmem:[%s1014_s2 - $0x7] sm:$0x80] %vm738_vm9, %v736_v35 }
 0x7cc   :  { %v731_v36 = vpop.xlane.xlu0 %730 }
 0x7cd   :  { %v737_v37 = vadd.f32 %v758_v12, %v731_v36 }
 0x7cf   :  { %741 = vst.msk [vmem:[%s1014_s2 + $0x1] sm:$0x1] %vm740_vm10, %v737_v37 }

</bundles_post_ra>
